<compile_context>
chip_gen: v6e
topology: v6e:2x2x1
jax: 0.10.0
libtpu: 0.0.40
codegen_flags: <defaults>
</compile_context>

<pallas_src>
import functools

import jax
import jax.numpy as jnp
from jax.experimental import pallas as pl
from jax.experimental.pallas import tpu as pltpu


def _gin_fused_kernel(*refs, num_layers):
    """refs = (P, x,
               W1_0, b1_0, ..., W1_{L-1}, b1_{L-1},      # conv1 GINLayer
               W2_0, b2_0, ..., W2_{L-1}, b2_{L-1},      # conv2 GINLayer
               out)."""
    p_ref, x_ref = refs[0], refs[1]
    param_refs = refs[2:-1]
    o_ref = refs[-1]

    p = p_ref[...]                      # (N, N) propagation matrix, loaded once
    h = x_ref[...]                      # (N, F) node features

    def gin_conv(h, prefs):
        # (1 + eps) * h + mean-neighbor(h)  ==  P @ h   (P precomputed).
        h = jnp.dot(p, h, preferred_element_type=jnp.float32)
        # GINLayer: chained linears, ReLU after every layer except the first.
        for i in range(num_layers):
            w = prefs[2 * i][...]
            b = prefs[2 * i + 1][...]   # (1, Fout) -> broadcast add over rows
            h = jnp.dot(h, w, preferred_element_type=jnp.float32) + b
            if i != 0:
                h = jnp.maximum(h, 0.0)
        return h

    h = gin_conv(h, param_refs[: 2 * num_layers])    # conv1
    h = jnp.maximum(h, 0.0)                          # F.relu between convs
    h = gin_conv(h, param_refs[2 * num_layers:])     # conv2
    o_ref[...] = h


def _propagation_matrix(adj, eps=0.0):
    """P = (1 + eps) * I + D^{-1} A  (mean aggregation folded with self term)."""
    n = adj.shape[0]
    a = (adj > 0).astype(jnp.float32)
    deg = jnp.sum(a, axis=1, keepdims=True)
    deg_inv = jnp.where(deg > 0, 1.0 / deg, 0.0)     # zero-degree rows -> 0 aggregate
    return deg_inv * a + (1.0 + eps) * jnp.eye(n, dtype=jnp.float32)


def _vmem_spec(arr):
    nd = arr.ndim
    return pl.BlockSpec(arr.shape, lambda *_: (0,) * nd, memory_space=pltpu.VMEM)


def gin_forward(adj, features, params, *, eps=0.0):
    """Fused GIN forward: one pallas_call for the whole two-conv network."""
    n, f_in = features.shape
    num_layers = len(params["conv1"])
    f_hid = params["conv1"][0][0].shape[1]
    f_out = params["conv2"][-1][0].shape[1]

    p = _propagation_matrix(adj, eps)

    flat = []
    for conv in ("conv1", "conv2"):
        for w, b in params[conv]:
            flat.append(w.astype(jnp.float32))
            flat.append(b.reshape(1, -1).astype(jnp.float32))

    inputs = [p, features.astype(jnp.float32)] + flat

    # Advisory cost hint: 2 aggregation matmuls + 2*num_layers linear matmuls.
    fmax = max(f_in, f_hid, f_out)
    flops = 2 * (2 * n * n * fmax) + 2 * num_layers * (2 * n * fmax * fmax)
    bytes_accessed = 4 * (n * n + n * f_in + n * f_out
                          + sum(int(a.size) for a in flat))

    kernel = functools.partial(_gin_fused_kernel, num_layers=num_layers)
    return pl.pallas_call(
        kernel,
        out_shape=jax.ShapeDtypeStruct((n, f_out), jnp.float32),
        in_specs=[_vmem_spec(a) for a in inputs],
        out_specs=pl.BlockSpec((n, f_out), lambda *_: (0, 0),
                               memory_space=pltpu.VMEM),
        cost_estimate=pl.CostEstimate(
            flops=int(flops), transcendentals=0,
            bytes_accessed=int(bytes_accessed)),
    )(*inputs)


def gin_reference(adj, features, params, *, eps=0.0):
    """Pure-JAX reference of the same semantics (for correctness check)."""
    p = _propagation_matrix(adj, eps)

    def gin_conv(h, layer_params):
        h = p @ h
        for i, (w, b) in enumerate(layer_params):
            h = h @ w + b
            if i != 0:
                h = jnp.maximum(h, 0.0)
        return h

    h = gin_conv(features, params["conv1"])
    h = jnp.maximum(h, 0.0)
    h = gin_conv(h, params["conv2"])
    return h


def init_gin_params(key, input_dim, hidden_dim, output_dim, num_layers):
    """Parameters matching GIN.__init__; nn.Linear weights stored as
    (fan_in, fan_out) so the kernel computes x @ W + b (PyTorch-default init).

    NOTE: the reference GINLayer chains Linear(in, out) blocks sequentially,
    which only type-checks when in_features == out_features for num_layers > 1;
    the demo picks equal dims so the chained semantics are reproduced exactly.
    """
    def linear_params(k, fin, fout):
        kw, kb = jax.random.split(k)
        bound = 1.0 / float(fin) ** 0.5
        w = jax.random.uniform(kw, (fin, fout), jnp.float32, -bound, bound)
        b = jax.random.uniform(kb, (fout,), jnp.float32, -bound, bound)
        return w, b

    keys = jax.random.split(key, 2 * num_layers)
    conv1 = [linear_params(keys[i], input_dim, hidden_dim)
             for i in range(num_layers)]
    conv2 = [linear_params(keys[num_layers + i], hidden_dim, output_dim)
             for i in range(num_layers)]
    return {"conv1": conv1, "conv2": conv2}


if __name__ == "__main__":
    # Small deterministic problem; lane-dense feature dims (multiple of 128).
    N = 128
    input_dim = hidden_dim = output_dim = 128
    num_layers = 2

    key = jax.random.PRNGKey(0)
    k_feat, k_adj, k_param = jax.random.split(key, 3)

    features = jax.random.normal(k_feat, (N, input_dim), jnp.float32)
    # Random sparse-ish adjacency; adj[i, j] != 0 means j is a neighbor of i.
    adj = jax.random.bernoulli(k_adj, p=0.1, shape=(N, N)).astype(jnp.float32)

    params = init_gin_params(k_param, input_dim, hidden_dim, output_dim,
                             num_layers)

    out = gin_forward(adj, features, params)
    out = jax.block_until_ready(out)

    assert out.shape == (N, output_dim), out.shape
    assert bool(jnp.all(jnp.isfinite(out))), "non-finite output"

    ref = gin_reference(adj, features, params)
    max_err = float(jnp.max(jnp.abs(out - ref)))
    assert max_err < 5e-2, f"mismatch vs reference: max abs err {max_err}"

    print("KERNEL_OK")
</pallas_src>

<mosaic_0001>
module attributes {stable_mosaic.version = 11 : i64} {
  func.func @_gin_fused_kernel(%arg0: memref<128x128xf32, #tpu.memory_space<vmem>>, %arg1: memref<128x128xf32, #tpu.memory_space<vmem>>, %arg2: memref<128x128xf32, #tpu.memory_space<vmem>>, %arg3: memref<1x128xf32, #tpu.memory_space<vmem>>, %arg4: memref<128x128xf32, #tpu.memory_space<vmem>>, %arg5: memref<1x128xf32, #tpu.memory_space<vmem>>, %arg6: memref<128x128xf32, #tpu.memory_space<vmem>>, %arg7: memref<1x128xf32, #tpu.memory_space<vmem>>, %arg8: memref<128x128xf32, #tpu.memory_space<vmem>>, %arg9: memref<1x128xf32, #tpu.memory_space<vmem>>, %arg10: memref<128x128xf32, #tpu.memory_space<vmem>>) attributes {dimension_semantics = [], scalar_prefetch = 0 : i64, scratch_operands = 0 : i64, tpu.core_type = #tpu.core_type<tc>} {
    %c0 = arith.constant 0 : index
    %c0_0 = arith.constant 0 : index
    %0 = vector.load %arg0[%c0, %c0_0] : memref<128x128xf32, #tpu.memory_space<vmem>>, vector<128x128xf32>
    %c0_1 = arith.constant 0 : index
    %c0_2 = arith.constant 0 : index
    %1 = vector.load %arg1[%c0_1, %c0_2] : memref<128x128xf32, #tpu.memory_space<vmem>>, vector<128x128xf32>
    %cst = arith.constant dense<0.000000e+00> : vector<128x128xf32>
    %2 = tpu.matmul %0, %1, %cst {dimension_numbers = #tpu.dot_dimension_numbers<[1], [0], [0], [1], [0, 0, 1, 1], [], []>} : vector<128x128xf32>, vector<128x128xf32>, vector<128x128xf32> -> vector<128x128xf32>
    %c0_3 = arith.constant 0 : index
    %c0_4 = arith.constant 0 : index
    %3 = vector.load %arg2[%c0_3, %c0_4] : memref<128x128xf32, #tpu.memory_space<vmem>>, vector<128x128xf32>
    %c0_5 = arith.constant 0 : index
    %c0_6 = arith.constant 0 : index
    %4 = vector.load %arg3[%c0_5, %c0_6] : memref<1x128xf32, #tpu.memory_space<vmem>>, vector<1x128xf32>
    %cst_7 = arith.constant dense<0.000000e+00> : vector<128x128xf32>
    %5 = tpu.matmul %2, %3, %cst_7 {dimension_numbers = #tpu.dot_dimension_numbers<[1], [0], [0], [1], [0, 0, 1, 1], [], []>} : vector<128x128xf32>, vector<128x128xf32>, vector<128x128xf32> -> vector<128x128xf32>
    %6 = vector.broadcast %4 : vector<1x128xf32> to vector<128x128xf32>
    %7 = arith.addf %5, %6 : vector<128x128xf32>
    %c0_8 = arith.constant 0 : index
    %c0_9 = arith.constant 0 : index
    %8 = vector.load %arg4[%c0_8, %c0_9] : memref<128x128xf32, #tpu.memory_space<vmem>>, vector<128x128xf32>
    %c0_10 = arith.constant 0 : index
    %c0_11 = arith.constant 0 : index
    %9 = vector.load %arg5[%c0_10, %c0_11] : memref<1x128xf32, #tpu.memory_space<vmem>>, vector<1x128xf32>
    %cst_12 = arith.constant dense<0.000000e+00> : vector<128x128xf32>
    %10 = tpu.matmul %7, %8, %cst_12 {dimension_numbers = #tpu.dot_dimension_numbers<[1], [0], [0], [1], [0, 0, 1, 1], [], []>} : vector<128x128xf32>, vector<128x128xf32>, vector<128x128xf32> -> vector<128x128xf32>
    %11 = vector.broadcast %9 : vector<1x128xf32> to vector<128x128xf32>
    %12 = arith.addf %10, %11 : vector<128x128xf32>
    %cst_13 = arith.constant 0.000000e+00 : f32
    %13 = vector.broadcast %cst_13 : f32 to vector<128x128xf32>
    %14 = arith.maximumf %12, %13 : vector<128x128xf32>
    %cst_14 = arith.constant 0.000000e+00 : f32
    %15 = vector.broadcast %cst_14 : f32 to vector<128x128xf32>
    %16 = arith.maximumf %14, %15 : vector<128x128xf32>
    %cst_15 = arith.constant dense<0.000000e+00> : vector<128x128xf32>
    %17 = tpu.matmul %0, %16, %cst_15 {dimension_numbers = #tpu.dot_dimension_numbers<[1], [0], [0], [1], [0, 0, 1, 1], [], []>} : vector<128x128xf32>, vector<128x128xf32>, vector<128x128xf32> -> vector<128x128xf32>
    %c0_16 = arith.constant 0 : index
    %c0_17 = arith.constant 0 : index
    %18 = vector.load %arg6[%c0_16, %c0_17] : memref<128x128xf32, #tpu.memory_space<vmem>>, vector<128x128xf32>
    %c0_18 = arith.constant 0 : index
    %c0_19 = arith.constant 0 : index
    %19 = vector.load %arg7[%c0_18, %c0_19] : memref<1x128xf32, #tpu.memory_space<vmem>>, vector<1x128xf32>
    %cst_20 = arith.constant dense<0.000000e+00> : vector<128x128xf32>
    %20 = tpu.matmul %17, %18, %cst_20 {dimension_numbers = #tpu.dot_dimension_numbers<[1], [0], [0], [1], [0, 0, 1, 1], [], []>} : vector<128x128xf32>, vector<128x128xf32>, vector<128x128xf32> -> vector<128x128xf32>
    %21 = vector.broadcast %19 : vector<1x128xf32> to vector<128x128xf32>
    %22 = arith.addf %20, %21 : vector<128x128xf32>
    %c0_21 = arith.constant 0 : index
    %c0_22 = arith.constant 0 : index
    %23 = vector.load %arg8[%c0_21, %c0_22] : memref<128x128xf32, #tpu.memory_space<vmem>>, vector<128x128xf32>
    %c0_23 = arith.constant 0 : index
    %c0_24 = arith.constant 0 : index
    %24 = vector.load %arg9[%c0_23, %c0_24] : memref<1x128xf32, #tpu.memory_space<vmem>>, vector<1x128xf32>
    %cst_25 = arith.constant dense<0.000000e+00> : vector<128x128xf32>
    %25 = tpu.matmul %22, %23, %cst_25 {dimension_numbers = #tpu.dot_dimension_numbers<[1], [0], [0], [1], [0, 0, 1, 1], [], []>} : vector<128x128xf32>, vector<128x128xf32>, vector<128x128xf32> -> vector<128x128xf32>
    %26 = vector.broadcast %24 : vector<1x128xf32> to vector<128x128xf32>
    %27 = arith.addf %25, %26 : vector<128x128xf32>
    %cst_26 = arith.constant 0.000000e+00 : f32
    %28 = vector.broadcast %cst_26 : f32 to vector<128x128xf32>
    %29 = arith.maximumf %27, %28 : vector<128x128xf32>
    %c0_27 = arith.constant 0 : index
    %c0_28 = arith.constant 0 : index
    %30 = vector.load %arg10[%c0_27, %c0_28] : memref<128x128xf32, #tpu.memory_space<vmem>>, vector<128x128xf32>
    tpu.vector_store %arg10[%c0_27, %c0_28], %29 {strides = array<i32>} : memref<128x128xf32, #tpu.memory_space<vmem>>, vector<128x128xf32>,
    return
  }
}

</mosaic_0001>

<bundles_post_ra>
// kernel: tpu_custom_call.1
= control target key start
LH: loop header
LB: loop body
LE: loop exit
PB: predicated region body
PF: predicated region fallthrough
CT: control target
= control target key end

     0   :  { %15 = vsyncpa [#allocation3], 0  ;;  %s2096_s0 = inlined_call_operand.hbm [shape: f32[128,128], index: 0, kind: input, shape index: {}]   ;;  %s2097_s1 = inlined_call_operand.hbm [shape: f32[128,128], index: 1, kind: input, shape index: {}]   ;;  %s2098_s2 = inlined_call_operand.hbm [shape: f32[128,128], index: 2, kind: input, shape index: {}]   ;;  %s2099_s3 = inlined_call_operand.vmem [shape: f32[1,128], index: 3, kind: input, shape index: {}]   ;;  %s2100_s4 = inlined_call_operand.hbm [shape: f32[128,128], index: 4, kind: input, shape index: {}]   ;;  %s2101_s5 = inlined_call_operand.vmem [shape: f32[1,128], index: 5, kind: input, shape index: {}]   ;;  %s2102_s6 = inlined_call_operand.hbm [shape: f32[128,128], index: 6, kind: input, shape index: {}]   ;;  %s2103_s7 = inlined_call_operand.vmem [shape: f32[1,128], index: 7, kind: input, shape index: {}]   ;;  %s2104_s8 = inlined_call_operand.hbm [shape: f32[128,128], index: 8, kind: input, shape index: {}]   ;;  %s2105_s9 = inlined_call_operand.vmem [shape: f32[1,128], index: 9, kind: input, shape index: {}]   ;;  %s2106_s10 = inlined_call_operand.hbm [shape: f32[128,128], index: 10, kind: output, shape index: {}]  }
   0x1   :  { %16 = vsyncpa [#allocation6], 0 }
   0x2   :  { %17 = vsyncpa [#allocation9], 0 }
   0x3   :  { %18 = vsyncpa [#allocation12], 0 }
   0x4   :  { %19 = vsyncpa [#allocation4], 0  ;;  %s1887_s13 = smov [#allocation5]   ;;  %s1888_s15 = smov [#allocation8]  }
   0x5   :  { %s37_s14 = sshll.u32 %s1887_s13, 4  ;;  %s63_s16 = sshll.u32 %s1888_s15, 4  ;;  %s38_s14 = int_to_ptr.vmem [resolvable:$true] %s37_s14  ;;  %s64_s16 = int_to_ptr.vmem [resolvable:$true] %s63_s16 }
   0x6   :  { %s1745_s17 = scalar_lea.vmem %s38_s14, 2048  ;;  %p1750_p1 = scmp.lt.s32.totalorder %s38_s14, %s38_s14 }
   0x7   :  { %p1746_p0 = scmp.ne.s32.totalorder %s38_s14, %s1745_s17  ;;  %p1751_p2 = scmp.lt.s32.totalorder %s1745_s17, %s1745_s17 }
   0x9   :  { %p1752_p3 = por %p1751_p2, %p1750_p1 }
   0xb   :  { %p1753_p4 = pnand %p1752_p3, %p1746_p0 }
   0xd   :  { %1756 = shalt.err (!%p1753_p4)
}
   0xe   :  { %s1889_s18 = smov 128   ;;  %s1890_s19 = smov 8  }
   0xf   :  { %43 = dma.hbm_to_vmem [thread:$0]  %s2097_s1, 2048, %s38_s14, [#allocation6], %s1889_s18, %s1889_s18, %s1890_s19  }
  0x10   :  { %s1765_s22 = scalar_lea.vmem %s64_s16, 2048  ;;  %p1770_p6 = scmp.lt.s32.totalorder %s64_s16, %s64_s16 }
  0x11   :  { %p1766_p5 = scmp.ne.s32.totalorder %s64_s16, %s1765_s22  ;;  %p1771_p7 = scmp.lt.s32.totalorder %s1765_s22, %s1765_s22 }
  0x13   :  { %p1772_p8 = por %p1771_p7, %p1770_p6 }
  0x15   :  { %p1773_p9 = pnand %p1772_p8, %p1766_p5 }
  0x17   :  { %1776 = shalt.err (!%p1773_p9)
}
  0x18   :  { %69 = dma.hbm_to_vmem [thread:$0]  %s2100_s4, 2048, %s64_s16, [#allocation9], %s1889_s18, %s1889_s18, %s1890_s19  }
  0x19   :  { %s1891_s25 = smov [#allocation2]   ;;  %s1892_s27 = smov [#allocation7]  }
  0x1a   :  { %s25_s26 = sshll.u32 %s1891_s25, 4  ;;  %s49_s28 = sshll.u32 %s1892_s27, 4  ;;  %s26_s26 = int_to_ptr.vmem [resolvable:$true] %s25_s26  ;;  %s50_s28 = int_to_ptr.vmem [resolvable:$true] %s49_s28 }
  0x1b   :  { %s1785_s1 = scalar_lea.vmem %s26_s26, 2048  ;;  %p1790_p11 = scmp.lt.s32.totalorder %s26_s26, %s26_s26 }
  0x1c   :  { %p1786_p10 = scmp.ne.s32.totalorder %s26_s26, %s1785_s1  ;;  %p1791_p12 = scmp.lt.s32.totalorder %s1785_s1, %s1785_s1 }
  0x1e   :  { %p1792_p13 = por %p1791_p12, %p1790_p11 }
  0x20   :  { %p1793_p0 = pnand %p1792_p13, %p1786_p10 }
  0x22   :  { %1796 = shalt.err (!%p1793_p0)
}
  0x23   :  { %31 = dma.hbm_to_vmem [thread:$0]  %s2096_s0, 2048, %s26_s26, [#allocation3], %s1889_s18, %s1889_s18, %s1890_s19  }
  0x24   :  { %s1805_s4 = scalar_lea.vmem %s50_s28, 2048  ;;  %p1810_p2 = scmp.lt.s32.totalorder %s50_s28, %s50_s28 }
  0x25   :  { %p1806_p1 = scmp.ne.s32.totalorder %s50_s28, %s1805_s4  ;;  %p1811_p3 = scmp.lt.s32.totalorder %s1805_s4, %s1805_s4 }
  0x27   :  { %p1812_p4 = por %p1811_p3, %p1810_p2 }
  0x29   :  { %p1813_p5 = pnand %p1812_p4, %p1806_p1 }
  0x2b   :  { %1816 = shalt.err (!%p1813_p5)
}
  0x2c   :  { %55 = dma.hbm_to_vmem [thread:$0]  %s2098_s2, 2048, %s50_s28, [#allocation6], %s1889_s18, %s1889_s18, %s1890_s19  }
  0x2d   :  { %s1893_s13 = smov [#allocation10]   ;;  %s1894_s15 = smov [#allocation11]  }
  0x2e   :  { %s77_s14 = sshll.u32 %s1893_s13, 4  ;;  %s91_s16 = sshll.u32 %s1894_s15, 4  ;;  %s78_s14 = int_to_ptr.vmem [resolvable:$true] %s77_s14  ;;  %s92_s16 = int_to_ptr.vmem [resolvable:$true] %s91_s16 }
  0x2f   :  { %s1825_s0 = scalar_lea.vmem %s78_s14, 2048  ;;  %p1830_p7 = scmp.lt.s32.totalorder %s78_s14, %s78_s14 }
  0x30   :  { %p1826_p6 = scmp.ne.s32.totalorder %s78_s14, %s1825_s0  ;;  %p1831_p8 = scmp.lt.s32.totalorder %s1825_s0, %s1825_s0 }
  0x32   :  { %p1832_p9 = por %p1831_p8, %p1830_p7 }
  0x34   :  { %p1833_p10 = pnand %p1832_p9, %p1826_p6 }
  0x36   :  { %1836 = shalt.err (!%p1833_p10)
}
  0x37   :  { %83 = dma.hbm_to_vmem [thread:$0]  %s2102_s6, 2048, %s78_s14, [#allocation9], %s1889_s18, %s1889_s18, %s1890_s19  }
  0x38   :  { %s1845_s2 = scalar_lea.vmem %s92_s16, 2048  ;;  %p1850_p12 = scmp.lt.s32.totalorder %s92_s16, %s92_s16 }
  0x39   :  { %p1846_p11 = scmp.ne.s32.totalorder %s92_s16, %s1845_s2  ;;  %p1851_p13 = scmp.lt.s32.totalorder %s1845_s2, %s1845_s2 }
  0x3b   :  { %p1852_p0 = por %p1851_p13, %p1850_p12 }
  0x3d   :  { %p1853_p1 = pnand %p1852_p0, %p1846_p11 }
  0x3f   :  { %1856 = shalt.err (!%p1853_p1)
}
  0x40   :  { %97 = dma.hbm_to_vmem [thread:$0]  %s2104_s8, 2048, %s92_s16, [#allocation12], %s1889_s18, %s1889_s18, %s1890_s19  }
  0x41   :  { %1877 = dma.done.wait [#allocation3], 2048  }
  0x42   :  { %1878 = vsyncadd [#allocation3], 4294965248 }
  0x43   :  { %1879 = dma.done.wait [#allocation6], 4096  }
  0x44   :  { %1880 = vsyncadd [#allocation6], 4294963200 }
  0x45   :  { %1881 = dma.done.wait [#allocation9], 4096  }
  0x46   :  { %1882 = vsyncadd [#allocation9], 4294963200 }
  0x47   :  { %1883 = dma.done.wait [#allocation12], 2048  }
  0x48   :  { %1884 = vsyncadd [#allocation12], 4294965248  ;;  %v149_v0 = vld [vmem:[#allocation5 + $0x78] sm:$0xff]  ;;  %v148_v1 = vld [vmem:[#allocation5 + $0x70] sm:$0xff] }
  0x49   :  { %1392 = vmatprep.subr.mxu0 %v149_v0  ;;  %v147_v2 = vld [vmem:[#allocation5 + $0x68] sm:$0xff]  ;;  %v146_v3 = vld [vmem:[#allocation5 + $0x60] sm:$0xff]  ;;  %v145_v5 = vld [vmem:[#allocation5 + $0x58] sm:$0xff] }
  0x4a   :  { %1393 = vmatpush3.msra.mxu0 %v149_v0  ;;  %v1987_v4 = vld [vmem:[#allocation2] sm:$0xff]  ;;  %v144_v6 = vld [vmem:[#allocation5 + $0x50] sm:$0xff]  ;;  %v143_v7 = vld [vmem:[#allocation5 + $0x48] sm:$0xff] }
  0x4b   :  { %1394 = vmatprep.subr.mxu0 %v148_v1  ;;  %1424 = vmatprep.mubr.f32.mxu0 %v1987_v4  ;;  %v310_v8 = vld [vmem:[#allocation7 + $0x78] sm:$0xff]  ;;  %v309_v9 = vld [vmem:[#allocation7 + $0x70] sm:$0xff]  ;;  %v142_v10 = vld [vmem:[#allocation5 + $0x40] sm:$0xff] }
  0x4c   :  { %1395 = vmatpush3.msra.mxu0 %v148_v1  ;;  %1448 = vmatprep.subr.mxu1 %v310_v8  ;;  %v308_v11 = vld [vmem:[#allocation7 + $0x68] sm:$0xff]  ;;  %v141_v12 = vld [vmem:[#allocation5 + $0x38] sm:$0xff]  ;;  %v307_v13 = vld [vmem:[#allocation7 + $0x60] sm:$0xff] }
  0x4d   :  { %1396 = vmatprep.subr.mxu0 %v147_v2  ;;  %1449 = vmatpush3.msra.mxu1 %v310_v8  ;;  %v140_v14 = vld [vmem:[#allocation5 + $0x30] sm:$0xff]  ;;  %v306_v15 = vld [vmem:[#allocation7 + $0x58] sm:$0xff]  ;;  %v139_v16 = vld [vmem:[#allocation5 + $0x28] sm:$0xff] }
  0x4e   :  { %1397 = vmatpush3.msra.mxu0 %v147_v2  ;;  %1450 = vmatprep.subr.mxu1 %v309_v9  ;;  %v305_v17 = vld [vmem:[#allocation7 + $0x50] sm:$0xff]  ;;  %v138_v18 = vld [vmem:[#allocation5 + $0x20] sm:$0xff]  ;;  %v304_v19 = vld [vmem:[#allocation7 + $0x48] sm:$0xff] }
  0x4f   :  { %1398 = vmatprep.subr.mxu0 %v146_v3  ;;  %1451 = vmatpush3.msra.mxu1 %v309_v9  ;;  %v137_v20 = vld [vmem:[#allocation5 + $0x18] sm:$0xff]  ;;  %v303_v21 = vld [vmem:[#allocation7 + $0x40] sm:$0xff]  ;;  %v136_v22 = vld [vmem:[#allocation5 + $0x10] sm:$0xff] }
  0x50   :  { %1399 = vmatpush3.msra.mxu0 %v146_v3  ;;  %1452 = vmatprep.subr.mxu1 %v308_v11  ;;  %v302_v23 = vld [vmem:[#allocation7 + $0x38] sm:$0xff]  ;;  %v135_v24 = vld [vmem:[#allocation5 + $0x8] sm:$0xff]  ;;  %v301_v25 = vld [vmem:[#allocation7 + $0x30] sm:$0xff] }
  0x51   :  { %1400 = vmatprep.subr.mxu0 %v145_v5  ;;  %1453 = vmatpush3.msra.mxu1 %v308_v11  ;;  %v134_v26 = vld [vmem:[#allocation5] sm:$0xff]  ;;  %v300_v27 = vld [vmem:[#allocation7 + $0x28] sm:$0xff]  ;;  %v1992_v30 = vld [vmem:[#allocation2 + $0x10] sm:$0xff] }
  0x52   :  { %1401 = vmatpush3.msra.mxu0 %v145_v5  ;;  %1454 = vmatprep.subr.mxu1 %v307_v13  ;;  %v1990_v28 = vld [vmem:[#allocation2 + $0x8] sm:$0xff]  ;;  %v299_v29 = vld [vmem:[#allocation7 + $0x20] sm:$0xff]  ;;  %v298_v31 = vld [vmem:[#allocation7 + $0x18] sm:$0xff] }
  0x53   :  { %1402 = vmatprep.subr.mxu0 %v144_v6  ;;  %1455 = vmatpush3.msra.mxu1 %v307_v13  ;;  %v1996_v32 = vld [vmem:[#allocation2 + $0x18] sm:$0xff]  ;;  %v297_v33 = vld [vmem:[#allocation7 + $0x10] sm:$0xff]  ;;  %v1998_v34 = vld [vmem:[#allocation2 + $0x20] sm:$0xff] }
  0x54   :  { %1403 = vmatpush3.msra.mxu0 %v144_v6  ;;  %1456 = vmatprep.subr.mxu1 %v306_v15  ;;  %v2002_v35 = vld [vmem:[#allocation2 + $0x28] sm:$0xff]  ;;  %v2004_v36 = vld [vmem:[#allocation2 + $0x30] sm:$0xff]  ;;  %v2008_v37 = vld [vmem:[#allocation2 + $0x38] sm:$0xff] }
  0x55   :  { %1404 = vmatprep.subr.mxu0 %v143_v7  ;;  %1457 = vmatpush3.msra.mxu1 %v306_v15  ;;  %v2010_v38 = vld [vmem:[#allocation2 + $0x40] sm:$0xff]  ;;  %v2014_v39 = vld [vmem:[#allocation2 + $0x48] sm:$0xff]  ;;  %v2016_v40 = vld [vmem:[#allocation2 + $0x50] sm:$0xff] }
  0x56   :  { %1405 = vmatpush3.msra.mxu0 %v143_v7  ;;  %1458 = vmatprep.subr.mxu1 %v305_v17  ;;  %v2020_v41 = vld [vmem:[#allocation2 + $0x58] sm:$0xff]  ;;  %v2022_v42 = vld [vmem:[#allocation2 + $0x60] sm:$0xff]  ;;  %v2026_v43 = vld [vmem:[#allocation2 + $0x68] sm:$0xff] }
  0x57   :  { %1406 = vmatprep.subr.mxu0 %v142_v10  ;;  %1459 = vmatpush3.msra.mxu1 %v305_v17  ;;  %v2028_v44 = vld [vmem:[#allocation2 + $0x70] sm:$0xff]  ;;  %v2032_v45 = vld [vmem:[#allocation2 + $0x78] sm:$0xff]  ;;  %v296_v46 = vld [vmem:[#allocation7 + $0x8] sm:$0xff] }
  0x58   :  { %1407 = vmatpush3.msra.mxu0 %v142_v10  ;;  %1460 = vmatprep.subr.mxu1 %v304_v19  ;;  %v295_v47 = vld [vmem:[#allocation7] sm:$0xff]  ;;  %v478_v48 = vld [vmem:[#allocation8 + $0x78] sm:$0xff]  ;;  %v477_v49 = vld [vmem:[#allocation8 + $0x70] sm:$0xff] }
  0x59   :  { %1408 = vmatprep.subr.mxu0 %v141_v12  ;;  %1461 = vmatpush3.msra.mxu1 %v304_v19  ;;  %v476_v50 = vld [vmem:[#allocation8 + $0x68] sm:$0xff]  ;;  %v475_v51 = vld [vmem:[#allocation8 + $0x60] sm:$0xff]  ;;  %v474_v52 = vld [vmem:[#allocation8 + $0x58] sm:$0xff] }
  0x5a   :  { %1409 = vmatpush3.msra.mxu0 %v141_v12  ;;  %1462 = vmatprep.subr.mxu1 %v303_v21  ;;  %v473_v53 = vld [vmem:[#allocation8 + $0x50] sm:$0xff]  ;;  %v472_v54 = vld [vmem:[#allocation8 + $0x48] sm:$0xff]  ;;  %v471_v55 = vld [vmem:[#allocation8 + $0x40] sm:$0xff] }
  0x5b   :  { %1410 = vmatprep.subr.mxu0 %v140_v14  ;;  %1463 = vmatpush3.msra.mxu1 %v303_v21  ;;  %v470_v56 = vld [vmem:[#allocation8 + $0x38] sm:$0xff]  ;;  %v469_v57 = vld [vmem:[#allocation8 + $0x30] sm:$0xff]  ;;  %v468_v58 = vld [vmem:[#allocation8 + $0x28] sm:$0xff] }
  0x5c   :  { %1411 = vmatpush3.msra.mxu0 %v140_v14  ;;  %1464 = vmatprep.subr.mxu1 %v302_v23  ;;  %v467_v59 = vld [vmem:[#allocation8 + $0x20] sm:$0xff]  ;;  %v466_v60 = vld [vmem:[#allocation8 + $0x18] sm:$0xff]  ;;  %v465_v14 = vld [vmem:[#allocation8 + $0x10] sm:$0xff] }
  0x5d   :  { %1412 = vmatprep.subr.mxu0 %v139_v16  ;;  %1465 = vmatpush3.msra.mxu1 %v302_v23  ;;  %v464_v15 = vld [vmem:[#allocation8 + $0x8] sm:$0xff] }
  0x5e   :  { %1413 = vmatpush3.msra.mxu0 %v139_v16  ;;  %1466 = vmatprep.subr.mxu1 %v301_v25  ;;  %v463_v16 = vld [vmem:[#allocation8] sm:$0xff] }
  0x5f   :  { %1414 = vmatprep.subr.mxu0 %v138_v18  ;;  %1467 = vmatpush3.msra.mxu1 %v301_v25 }
  0x60   :  { %1415 = vmatpush3.msra.mxu0 %v138_v18  ;;  %1468 = vmatprep.subr.mxu1 %v300_v27  ;;  %v1196_v18 = vld [vmem:[%s2099_s3] ss:$0 sm:$0xff] }
  0x61   :  { %1416 = vmatprep.subr.mxu0 %v137_v20  ;;  %1469 = vmatpush3.msra.mxu1 %v300_v27 }
  0x62   :  { %1417 = vmatpush3.msra.mxu0 %v137_v20  ;;  %1470 = vmatprep.subr.mxu1 %v299_v29 }
  0x63   :  { %1418 = vmatprep.subr.mxu0 %v136_v22  ;;  %1471 = vmatpush3.msra.mxu1 %v299_v29 }
  0x64   :  { %1419 = vmatpush3.msra.mxu0 %v136_v22  ;;  %1472 = vmatprep.subr.mxu1 %v298_v31 }
  0x65   :  { %1420 = vmatprep.subr.mxu0 %v135_v24  ;;  %1473 = vmatpush3.msra.mxu1 %v298_v31 }
  0x66   :  { %1421 = vmatpush3.msra.mxu0 %v135_v24  ;;  %1474 = vmatprep.subr.mxu1 %v297_v33 }
  0x67   :  { %1422 = vmatprep.subr.mxu0 %v134_v26  ;;  %1475 = vmatpush3.msra.mxu1 %v297_v33 }
  0x68   :  { %1423 = vmatpush3.msra.mxu0 %v134_v26  ;;  %1476 = vmatprep.subr.mxu1 %v296_v46 }
  0x69   :  { %1425 = vmatmul.mubr.f32.vlgmr.msra.gmra.mxu0 %v1990_v28  ;;  %1477 = vmatpush3.msra.mxu1 %v296_v46 }
  0x6a   :  { %1427 = vmatprep.mubr.f32.mxu0 %v1992_v30  ;;  %1478 = vmatprep.subr.mxu1 %v295_v47 }
  0x6b   :  { %1479 = vmatpush3.msra.mxu1 %v295_v47  ;;  %1504 = vmatprep.subr.mxu0 %v478_v48 }
  0x6c   :  { %1505 = vmatpush3.msra.mxu0 %v478_v48 }
  0x6d   :  { %1428 = vmatmul.mubr.f32.gmra.mxu0 %v1996_v32  ;;  %1506 = vmatprep.subr.mxu0 %v477_v49 }
  0x6e   :  { %1430 = vmatprep.mubr.f32.mxu0 %v1998_v34  ;;  %1507 = vmatpush3.msra.mxu0 %v477_v49 }
  0x6f   :  { %1508 = vmatprep.subr.mxu0 %v476_v50 }
  0x70   :  { %1509 = vmatpush3.msra.mxu0 %v476_v50 }
  0x71   :  { %1431 = vmatmul.mubr.f32.gmra.mxu0 %v2002_v35  ;;  %1510 = vmatprep.subr.mxu0 %v475_v51 }
  0x72   :  { %1433 = vmatprep.mubr.f32.mxu0 %v2004_v36  ;;  %1511 = vmatpush3.msra.mxu0 %v475_v51 }
  0x73   :  { %1512 = vmatprep.subr.mxu0 %v474_v52 }
  0x74   :  { %1513 = vmatpush3.msra.mxu0 %v474_v52 }
  0x75   :  { %1434 = vmatmul.mubr.f32.gmra.mxu0 %v2008_v37  ;;  %1514 = vmatprep.subr.mxu0 %v473_v53 }
  0x76   :  { %1436 = vmatprep.mubr.f32.mxu0 %v2010_v38  ;;  %1515 = vmatpush3.msra.mxu0 %v473_v53 }
  0x77   :  { %1516 = vmatprep.subr.mxu0 %v472_v54 }
  0x78   :  { %1517 = vmatpush3.msra.mxu0 %v472_v54 }
  0x79   :  { %1437 = vmatmul.mubr.f32.gmra.mxu0 %v2014_v39  ;;  %1518 = vmatprep.subr.mxu0 %v471_v55 }
  0x7a   :  { %1439 = vmatprep.mubr.f32.mxu0 %v2016_v40  ;;  %1519 = vmatpush3.msra.mxu0 %v471_v55 }
  0x7b   :  { %1520 = vmatprep.subr.mxu0 %v470_v56 }
  0x7c   :  { %1521 = vmatpush3.msra.mxu0 %v470_v56 }
  0x7d   :  { %1440 = vmatmul.mubr.f32.gmra.mxu0 %v2020_v41  ;;  %1522 = vmatprep.subr.mxu0 %v469_v57 }
  0x7e   :  { %1442 = vmatprep.mubr.f32.mxu0 %v2022_v42  ;;  %1523 = vmatpush3.msra.mxu0 %v469_v57 }
  0x7f   :  { %1524 = vmatprep.subr.mxu0 %v468_v58 }
  0x80   :  { %1525 = vmatpush3.msra.mxu0 %v468_v58 }
  0x81   :  { %1443 = vmatmul.mubr.f32.gmra.mxu0 %v2026_v43  ;;  %1526 = vmatprep.subr.mxu0 %v467_v59 }
  0x82   :  { %1445 = vmatprep.mubr.f32.mxu0 %v2028_v44  ;;  %1527 = vmatpush3.msra.mxu0 %v467_v59 }
  0x83   :  { %1528 = vmatprep.subr.mxu0 %v466_v60 }
  0x84   :  { %1529 = vmatpush3.msra.mxu0 %v466_v60 }
  0x85   :  { %1446 = vmatmul.mubr.f32.gmra.mxu0 %v2032_v45  ;;  %1530 = vmatprep.subr.mxu0 %v465_v14 }
  0x86   :  { %1531 = vmatpush3.msra.mxu0 %v465_v14  ;;  %v810_v14 = vld [vmem:[#allocation10 + $0x10] sm:$0xff] }
  0x87   :  { %1532 = vmatprep.subr.mxu0 %v464_v15 }
  0x88   :  { %1533 = vmatpush3.msra.mxu0 %v464_v15 }
  0x89   :  { %1534 = vmatprep.subr.mxu0 %v463_v16 }
  0x8a   :  { %1535 = vmatpush3.msra.mxu0 %v463_v16 }
 0x129   :  { %v1426_v61 = vpop.f32.mrf.mxu0 }
 0x12b   :  { %v216_v62 = vpop.f32.mrf.mxu0 }
 0x12c   :  { %1480 = vmatprep.mubr.f32.mxu1 %v216_v62 }
 0x12d   :  { %v1429_v63 = vpop.f32.mrf.mxu0  ;;  %1481 = vmatmul.mubr.f32.vlgmr.msra.gmra.mxu1 %v1426_v61 }
 0x12f   :  { %v226_v0 = vpop.f32.mrf.mxu0 }
 0x130   :  { %1483 = vmatprep.mubr.f32.mxu1 %v226_v0  ;;  %v823_v0 = vld [vmem:[#allocation10 + $0x78] sm:$0xff] }
 0x131   :  { %v1432_v1 = vpop.f32.mrf.mxu0  ;;  %1484 = vmatmul.mubr.f32.gmra.mxu1 %v1429_v63  ;;  %1616 = vmatprep.subr.mxu0 %v823_v0 }
 0x133   :  { %v236_v2 = vpop.f32.mrf.mxu0 }
 0x134   :  { %1486 = vmatprep.mubr.f32.mxu1 %v236_v2  ;;  %v821_v2 = vld [vmem:[#allocation10 + $0x68] sm:$0xff] }
 0x135   :  { %v1435_v3 = vpop.f32.mrf.mxu0  ;;  %1487 = vmatmul.mubr.f32.gmra.mxu1 %v1432_v1  ;;  %v822_v1 = vld [vmem:[#allocation10 + $0x70] sm:$0xff] }
 0x137   :  { %v246_v5 = vpop.f32.mrf.mxu0 }
 0x138   :  { %1489 = vmatprep.mubr.f32.mxu1 %v246_v5  ;;  %v819_v5 = vld [vmem:[#allocation10 + $0x58] sm:$0xff] }
 0x139   :  { %v1438_v6 = vpop.f32.mrf.mxu0  ;;  %1490 = vmatmul.mubr.f32.gmra.mxu1 %v1435_v3  ;;  %v820_v3 = vld [vmem:[#allocation10 + $0x60] sm:$0xff] }
 0x13b   :  { %v256_v7 = vpop.f32.mrf.mxu0 }
 0x13c   :  { %1492 = vmatprep.mubr.f32.mxu1 %v256_v7  ;;  %v817_v7 = vld [vmem:[#allocation10 + $0x48] sm:$0xff] }
 0x13d   :  { %v1441_v8 = vpop.f32.mrf.mxu0  ;;  %1493 = vmatmul.mubr.f32.gmra.mxu1 %v1438_v6  ;;  %v818_v6 = vld [vmem:[#allocation10 + $0x50] sm:$0xff] }
 0x13f   :  { %v266_v9 = vpop.f32.mrf.mxu0 }
 0x140   :  { %1495 = vmatprep.mubr.f32.mxu1 %v266_v9  ;;  %v815_v9 = vld [vmem:[#allocation10 + $0x38] sm:$0xff] }
 0x141   :  { %v1444_v10 = vpop.f32.mrf.mxu0  ;;  %1496 = vmatmul.mubr.f32.gmra.mxu1 %v1441_v8  ;;  %v816_v8 = vld [vmem:[#allocation10 + $0x40] sm:$0xff] }
 0x143   :  { %v276_v11 = vpop.f32.mrf.mxu0 }
 0x144   :  { %1498 = vmatprep.mubr.f32.mxu1 %v276_v11  ;;  %v813_v11 = vld [vmem:[#allocation10 + $0x28] sm:$0xff] }
 0x145   :  { %v1447_v12 = vpop.f32.mrf.mxu0  ;;  %1499 = vmatmul.mubr.f32.gmra.mxu1 %v1444_v10  ;;  %v814_v10 = vld [vmem:[#allocation10 + $0x30] sm:$0xff] }
 0x147   :  { %v286_v13 = vpop.f32.mrf.mxu0 }
 0x148   :  { %1501 = vmatprep.mubr.f32.mxu1 %v286_v13  ;;  %v811_v13 = vld [vmem:[#allocation10 + $0x18] sm:$0xff] }
 0x149   :  { %1502 = vmatmul.mubr.f32.gmra.mxu1 %v1447_v12  ;;  %v812_v12 = vld [vmem:[#allocation10 + $0x20] sm:$0xff] }
 0x14a   :  { %1592 = vmatprep.mubr.f32.mxu1 %v1987_v4 }
 0x1ed   :  { %v1482_v17 = vpop.f32.mrf.mxu1 }
 0x1ee   :  { %v390_v21 = vadd.f32 %v1482_v17, %v1196_v18 }
 0x1ef   :  { %v384_v19 = vpop.f32.mrf.mxu1 }
 0x1f0   :  { %v385_v20 = vadd.f32 %v1196_v18, %v384_v19 }
 0x1f1   :  { %v1485_v22 = vpop.f32.mrf.mxu1 }
 0x1f2   :  { %1536 = vmatprep.mubr.f32.mxu0 %v385_v20  ;;  %v400_v24 = vadd.f32 %v1485_v22, %v1196_v18 }
 0x1f3   :  { %v394_v4 = vpop.f32.mrf.mxu1  ;;  %1537 = vmatmul.mubr.f32.vlgmr.msra.gmra.mxu0 %v390_v21 }
 0x1f4   :  { %v395_v23 = vadd.f32 %v1196_v18, %v394_v4  ;;  %1617 = vmatpush3.msra.mxu0 %v823_v0 }
 0x1f5   :  { %v1488_v25 = vpop.f32.mrf.mxu1  ;;  %1618 = vmatprep.subr.mxu0 %v822_v1 }
 0x1f6   :  { %1539 = vmatprep.mubr.f32.mxu0 %v395_v23  ;;  %v410_v29 = vadd.f32 %v1488_v25, %v1196_v18  ;;  %1619 = vmatpush3.msra.mxu0 %v822_v1 }
 0x1f7   :  { %v404_v26 = vpop.f32.mrf.mxu1  ;;  %1540 = vmatmul.mubr.f32.gmra.mxu0 %v400_v24  ;;  %1620 = vmatprep.subr.mxu0 %v821_v2 }
 0x1f8   :  { %v405_v27 = vadd.f32 %v1196_v18, %v404_v26  ;;  %1621 = vmatpush3.msra.mxu0 %v821_v2 }
 0x1f9   :  { %v1491_v31 = vpop.f32.mrf.mxu1  ;;  %1622 = vmatprep.subr.mxu0 %v820_v3 }
 0x1fa   :  { %1542 = vmatprep.mubr.f32.mxu0 %v405_v27  ;;  %v420_v47 = vadd.f32 %v1491_v31, %v1196_v18  ;;  %1623 = vmatpush3.msra.mxu0 %v820_v3 }
 0x1fb   :  { %v414_v33 = vpop.f32.mrf.mxu1  ;;  %1543 = vmatmul.mubr.f32.gmra.mxu0 %v410_v29  ;;  %1624 = vmatprep.subr.mxu0 %v819_v5  ;;  %v1197_v29 = vld [vmem:[%s2101_s5] ss:$0 sm:$0xff] }
 0x1fc   :  { %v415_v46 = vadd.f32 %v1196_v18, %v414_v33  ;;  %1625 = vmatpush3.msra.mxu0 %v819_v5 }
 0x1fd   :  { %v1494_v48 = vpop.f32.mrf.mxu1  ;;  %1626 = vmatprep.subr.mxu0 %v818_v6 }
 0x1fe   :  { %1545 = vmatprep.mubr.f32.mxu0 %v415_v46  ;;  %v430_v51 = vadd.f32 %v1494_v48, %v1196_v18  ;;  %1627 = vmatpush3.msra.mxu0 %v818_v6 }
 0x1ff   :  { %v424_v49 = vpop.f32.mrf.mxu1  ;;  %1546 = vmatmul.mubr.f32.gmra.mxu0 %v420_v47  ;;  %1628 = vmatprep.subr.mxu0 %v817_v7 }
 0x200   :  { %v425_v50 = vadd.f32 %v1196_v18, %v424_v49  ;;  %1629 = vmatpush3.msra.mxu0 %v817_v7 }
 0x201   :  { %v1497_v52 = vpop.f32.mrf.mxu1  ;;  %1630 = vmatprep.subr.mxu0 %v816_v8 }
 0x202   :  { %1548 = vmatprep.mubr.f32.mxu0 %v425_v50  ;;  %v440_v55 = vadd.f32 %v1497_v52, %v1196_v18  ;;  %1631 = vmatpush3.msra.mxu0 %v816_v8 }
 0x203   :  { %v434_v53 = vpop.f32.mrf.mxu1  ;;  %1549 = vmatmul.mubr.f32.gmra.mxu0 %v430_v51  ;;  %1632 = vmatprep.subr.mxu0 %v815_v9 }
 0x204   :  { %v435_v54 = vadd.f32 %v1196_v18, %v434_v53  ;;  %1633 = vmatpush3.msra.mxu0 %v815_v9 }
 0x205   :  { %v1500_v56 = vpop.f32.mrf.mxu1  ;;  %1634 = vmatprep.subr.mxu0 %v814_v10 }
 0x206   :  { %1551 = vmatprep.mubr.f32.mxu0 %v435_v54  ;;  %v450_v59 = vadd.f32 %v1500_v56, %v1196_v18  ;;  %1635 = vmatpush3.msra.mxu0 %v814_v10 }
 0x207   :  { %v444_v57 = vpop.f32.mrf.mxu1  ;;  %1552 = vmatmul.mubr.f32.gmra.mxu0 %v440_v55  ;;  %1636 = vmatprep.subr.mxu0 %v813_v11 }
 0x208   :  { %v445_v58 = vadd.f32 %v1196_v18, %v444_v57  ;;  %1637 = vmatpush3.msra.mxu0 %v813_v11 }
 0x209   :  { %v1503_v60 = vpop.f32.mrf.mxu1  ;;  %1638 = vmatprep.subr.mxu0 %v812_v12 }
 0x20a   :  { %1554 = vmatprep.mubr.f32.mxu0 %v445_v58  ;;  %v460_v63 = vadd.f32 %v1503_v60, %v1196_v18  ;;  %1639 = vmatpush3.msra.mxu0 %v812_v12 }
 0x20b   :  { %v454_v61 = vpop.f32.mrf.mxu1  ;;  %1555 = vmatmul.mubr.f32.gmra.mxu0 %v450_v59  ;;  %1640 = vmatprep.subr.mxu0 %v811_v13 }
 0x20c   :  { %v455_v62 = vadd.f32 %v1196_v18, %v454_v61  ;;  %1641 = vmatpush3.msra.mxu0 %v811_v13 }
 0x20d   :  { %1642 = vmatprep.subr.mxu0 %v810_v14 }
 0x20e   :  { %1557 = vmatprep.mubr.f32.mxu0 %v455_v62  ;;  %1643 = vmatpush3.msra.mxu0 %v810_v14 }
 0x20f   :  { %1558 = vmatmul.mubr.f32.gmra.mxu0 %v460_v63 }
 0x2b3   :  { %v2039_v15 = vpop.f32.mrf.mxu0 }
 0x2b5   :  { %v2041_v16 = vpop.f32.mrf.mxu0 }
 0x2b7   :  { %v1541_v17 = vpop.f32.mrf.mxu0 }
 0x2b8   :  { %v568_v13 = vadd.f32 %v1541_v17, %v1197_v29 }
 0x2b9   :  { %v2043_v18 = vpop.f32.mrf.mxu0 }
 0x2bb   :  { %v1544_v19 = vpop.f32.mrf.mxu0 }
 0x2bc   :  { %v578_v7 = vadd.f32 %v1544_v19, %v1197_v29  ;;  %v558_v19 = vadd.f32 %v2039_v15, %v1197_v29 }
 0x2bd   :  { %v572_v20 = vpop.f32.mrf.mxu0 }
 0x2be   :  { %v573_v10 = vadd.f32 %v1197_v29, %v572_v20  ;;  %v636_v14 = vmax.f32 %v578_v7, 0.0  ;;  %v553_v20 = vadd.f32 %v1197_v29, %v2041_v16 }
 0x2bf   :  { %v1547_v21 = vpop.f32.mrf.mxu0 }
 0x2c0   :  { %v588_v0 = vadd.f32 %v1547_v21, %v1197_v29 }
 0x2c1   :  { %v582_v22 = vpop.f32.mrf.mxu0 }
 0x2c2   :  { %v583_v3 = vadd.f32 %v1197_v29, %v582_v22  ;;  %v638_v8 = vmax.f32 %v588_v0, 0.0  ;;  %v563_v22 = vadd.f32 %v1197_v29, %v2043_v18  ;;  %v631_v18 = vmax.f32 %v553_v20, 0.0 }
 0x2c3   :  { %v1550_v4 = vpop.f32.mrf.mxu0 }
 0x2c4   :  { %v598_v58 = vadd.f32 %v1550_v4, %v1197_v29  ;;  %v637_v11 = vmax.f32 %v583_v3, 0.0  ;;  %v654_v21 = vmax.f32 %v638_v8, 0.0  ;;  %v635_v4 = vmax.f32 %v573_v10, 0.0 }
 0x2c5   :  { %v592_v23 = vpop.f32.mrf.mxu0  ;;  %v647_v15 = vmax.f32 %v631_v18, 0.0 }
 0x2c6   :  { %v593_v61 = vadd.f32 %v1197_v29, %v592_v23  ;;  %v640_v1 = vmax.f32 %v598_v58, 0.0  ;;  %v653_v23 = vmax.f32 %v637_v11, 0.0  ;;  %v651_v17 = vmax.f32 %v635_v4, 0.0 }
 0x2c7   :  { %v1553_v24 = vpop.f32.mrf.mxu0 }
 0x2c8   :  { %v608_v51 = vadd.f32 %v1553_v24, %v1197_v29  ;;  %v639_v5 = vmax.f32 %v593_v61, 0.0  ;;  %v656_v9 = vmax.f32 %v640_v1, 0.0  ;;  %v634_v24 = vmax.f32 %v568_v13, 0.0  ;;  %v978_v61 = vld [vmem:[#allocation11 + $0x10] sm:$0xff]  ;;  %v1198_v1 = vld [vmem:[%s2103_s7] ss:$0 sm:$0xff] }
 0x2c9   :  { %v602_v25 = vpop.f32.mrf.mxu0 }
 0x2ca   :  { %v603_v55 = vadd.f32 %v1197_v29, %v602_v25  ;;  %v642_v59 = vmax.f32 %v608_v51, 0.0  ;;  %v655_v12 = vmax.f32 %v639_v5, 0.0  ;;  %v652_v25 = vmax.f32 %v636_v14, 0.0 }
 0x2cb   :  { %v1556_v26 = vpop.f32.mrf.mxu0 }
 0x2cc   :  { %v618_v33 = vadd.f32 %v1556_v26, %v1197_v29  ;;  %v641_v62 = vmax.f32 %v603_v55, 0.0  ;;  %v658_v2 = vmax.f32 %v642_v59, 0.0  ;;  %v633_v26 = vmax.f32 %v563_v22, 0.0 }
 0x2cd   :  { %v612_v27 = vpop.f32.mrf.mxu0 }
 0x2ce   :  { %v613_v48 = vadd.f32 %v1197_v29, %v612_v27  ;;  %v644_v52 = vmax.f32 %v618_v33, 0.0  ;;  %v657_v6 = vmax.f32 %v641_v62, 0.0  ;;  %v632_v27 = vmax.f32 %v558_v19, 0.0  ;;  %v977_v62 = vld [vmem:[#allocation11 + $0x8] sm:$0xff] }
 0x2cf   :  { %v1559_v31 = vpop.f32.mrf.mxu0  ;;  %v649_v33 = vmax.f32 %v633_v26, 0.0 }
 0x2d0   :  { %v628_v46 = vadd.f32 %v1559_v31, %v1197_v29  ;;  %v643_v56 = vmax.f32 %v613_v48, 0.0  ;;  %v660_v60 = vmax.f32 %v644_v52, 0.0  ;;  %v650_v31 = vmax.f32 %v634_v24, 0.0 }
 0x2d1   :  { %v622_v47 = vpop.f32.mrf.mxu0 }
 0x2d2   :  { %v646_v49 = vmax.f32 %v628_v46, 0.0  ;;  %v623_v50 = vadd.f32 %v1197_v29, %v622_v47  ;;  %v659_v63 = vmax.f32 %v643_v56, 0.0  ;;  %v648_v46 = vmax.f32 %v632_v27, 0.0 }
 0x2d4   :  { %v662_v53 = vmax.f32 %v646_v49, 0.0  ;;  %v645_v54 = vmax.f32 %v623_v50, 0.0 }
 0x2d6   :  { %v661_v57 = vmax.f32 %v645_v54, 0.0  ;;  %1560 = vmatprep.subr.mxu1 %v662_v53 }
 0x2d7   :  { %1561 = vmatpush3.msra.mxu1 %v662_v53 }
 0x2d8   :  { %1562 = vmatprep.subr.mxu1 %v661_v57 }
 0x2d9   :  { %1563 = vmatpush3.msra.mxu1 %v661_v57 }
 0x2da   :  { %1564 = vmatprep.subr.mxu1 %v660_v60 }
 0x2db   :  { %1565 = vmatpush3.msra.mxu1 %v660_v60 }
 0x2dc   :  { %1566 = vmatprep.subr.mxu1 %v659_v63 }
 0x2dd   :  { %1567 = vmatpush3.msra.mxu1 %v659_v63  ;;  %v976_v63 = vld [vmem:[#allocation11] sm:$0xff] }
 0x2de   :  { %1568 = vmatprep.subr.mxu1 %v658_v2 }
 0x2df   :  { %1569 = vmatpush3.msra.mxu1 %v658_v2 }
 0x2e0   :  { %1570 = vmatprep.subr.mxu1 %v657_v6 }
 0x2e1   :  { %1571 = vmatpush3.msra.mxu1 %v657_v6 }
 0x2e2   :  { %1572 = vmatprep.subr.mxu1 %v656_v9 }
 0x2e3   :  { %1573 = vmatpush3.msra.mxu1 %v656_v9 }
 0x2e4   :  { %1574 = vmatprep.subr.mxu1 %v655_v12 }
 0x2e5   :  { %1575 = vmatpush3.msra.mxu1 %v655_v12 }
 0x2e6   :  { %1576 = vmatprep.subr.mxu1 %v654_v21 }
 0x2e7   :  { %1577 = vmatpush3.msra.mxu1 %v654_v21 }
 0x2e8   :  { %1578 = vmatprep.subr.mxu1 %v653_v23 }
 0x2e9   :  { %1579 = vmatpush3.msra.mxu1 %v653_v23 }
 0x2ea   :  { %1580 = vmatprep.subr.mxu1 %v652_v25 }
 0x2eb   :  { %1581 = vmatpush3.msra.mxu1 %v652_v25 }
 0x2ec   :  { %1582 = vmatprep.subr.mxu1 %v651_v17 }
 0x2ed   :  { %1583 = vmatpush3.msra.mxu1 %v651_v17 }
 0x2ee   :  { %1584 = vmatprep.subr.mxu1 %v650_v31 }
 0x2ef   :  { %1585 = vmatpush3.msra.mxu1 %v650_v31 }
 0x2f0   :  { %1586 = vmatprep.subr.mxu1 %v649_v33 }
 0x2f1   :  { %1587 = vmatpush3.msra.mxu1 %v649_v33 }
 0x2f2   :  { %1588 = vmatprep.subr.mxu1 %v648_v46 }
 0x2f3   :  { %1589 = vmatpush3.msra.mxu1 %v648_v46 }
 0x2f4   :  { %1590 = vmatprep.subr.mxu1 %v647_v15 }
 0x2f5   :  { %1591 = vmatpush3.msra.mxu1 %v647_v15 }
 0x2f6   :  { %1593 = vmatmul.mubr.f32.vlgmr.msra.gmra.mxu1 %v1990_v28  ;;  %v809_v28 = vld [vmem:[#allocation10 + $0x8] sm:$0xff] }
 0x2f7   :  { %1595 = vmatprep.mubr.f32.mxu1 %v1992_v30  ;;  %1644 = vmatprep.subr.mxu0 %v809_v28  ;;  %v808_v30 = vld [vmem:[#allocation10] sm:$0xff] }
 0x2f8   :  { %1645 = vmatpush3.msra.mxu0 %v809_v28 }
 0x2f9   :  { %1646 = vmatprep.subr.mxu0 %v808_v30 }
 0x2fa   :  { %1596 = vmatmul.mubr.f32.gmra.mxu1 %v1996_v32  ;;  %1647 = vmatpush3.msra.mxu0 %v808_v30  ;;  %v991_v32 = vld [vmem:[#allocation11 + $0x78] sm:$0xff] }
 0x2fb   :  { %1598 = vmatprep.mubr.f32.mxu1 %v1998_v34  ;;  %v990_v34 = vld [vmem:[#allocation11 + $0x70] sm:$0xff]  ;;  %1672 = vmatprep.subr.mxu1 %v991_v32 }
 0x2fc   :  { %1673 = vmatpush3.msra.mxu1 %v991_v32 }
 0x2fd   :  { %1674 = vmatprep.subr.mxu1 %v990_v34 }
 0x2fe   :  { %1599 = vmatmul.mubr.f32.gmra.mxu1 %v2002_v35  ;;  %v989_v35 = vld [vmem:[#allocation11 + $0x68] sm:$0xff] }
 0x2ff   :  { %1601 = vmatprep.mubr.f32.mxu1 %v2004_v36  ;;  %1675 = vmatpush3.msra.mxu1 %v990_v34  ;;  %v988_v36 = vld [vmem:[#allocation11 + $0x60] sm:$0xff] }
 0x300   :  { %1676 = vmatprep.subr.mxu1 %v989_v35  ;;  %v2072_v34 = vld [vmem:[%s2105_s9] ss:$0 sm:$0xff]  ;;  %s1895_s9 = smov [#allocation13]  }
 0x301   :  { %1677 = vmatpush3.msra.mxu1 %v989_v35  ;;  %s1181_s26 = sshll.u32 %s1895_s9, 4  ;;  %s1182_s26 = int_to_ptr.vmem [resolvable:$true] %s1181_s26 }
 0x302   :  { %1602 = vmatmul.mubr.f32.gmra.mxu1 %v2008_v37  ;;  %v987_v37 = vld [vmem:[#allocation11 + $0x58] sm:$0xff]  ;;  %1678 = vmatprep.subr.mxu1 %v988_v36  ;;  %s1857_s27 = scalar_lea.vmem %s1182_s26, 2048  ;;  %p1862_p3 = scmp.lt.s32.totalorder %s1182_s26, %s1182_s26 }
 0x303   :  { %1604 = vmatprep.mubr.f32.mxu1 %v2010_v38  ;;  %1679 = vmatpush3.msra.mxu1 %v988_v36  ;;  %v986_v38 = vld [vmem:[#allocation11 + $0x50] sm:$0xff]  ;;  %p1858_p2 = scmp.ne.s32.totalorder %s1182_s26, %s1857_s27  ;;  %p1863_p4 = scmp.lt.s32.totalorder %s1857_s27, %s1857_s27 }
 0x304   :  { %1680 = vmatprep.subr.mxu1 %v987_v37 }
 0x305   :  { %1681 = vmatpush3.msra.mxu1 %v987_v37  ;;  %p1864_p5 = por %p1863_p4, %p1862_p3 }
 0x306   :  { %1605 = vmatmul.mubr.f32.gmra.mxu1 %v2014_v39  ;;  %v985_v39 = vld [vmem:[#allocation11 + $0x48] sm:$0xff]  ;;  %1682 = vmatprep.subr.mxu1 %v986_v38 }
 0x307   :  { %1607 = vmatprep.mubr.f32.mxu1 %v2016_v40  ;;  %1683 = vmatpush3.msra.mxu1 %v986_v38  ;;  %v984_v40 = vld [vmem:[#allocation11 + $0x40] sm:$0xff]  ;;  %p1865_p6 = pnand %p1864_p5, %p1858_p2 }
 0x308   :  { %1684 = vmatprep.subr.mxu1 %v985_v39 }
 0x309   :  { %1685 = vmatpush3.msra.mxu1 %v985_v39 }
 0x30a   :  { %1608 = vmatmul.mubr.f32.gmra.mxu1 %v2020_v41  ;;  %v983_v41 = vld [vmem:[#allocation11 + $0x38] sm:$0xff]  ;;  %1686 = vmatprep.subr.mxu1 %v984_v40 }
 0x30b   :  { %1610 = vmatprep.mubr.f32.mxu1 %v2022_v42  ;;  %1687 = vmatpush3.msra.mxu1 %v984_v40  ;;  %v982_v42 = vld [vmem:[#allocation11 + $0x30] sm:$0xff] }
 0x30c   :  { %1688 = vmatprep.subr.mxu1 %v983_v41 }
 0x30d   :  { %1689 = vmatpush3.msra.mxu1 %v983_v41 }
 0x30e   :  { %1611 = vmatmul.mubr.f32.gmra.mxu1 %v2026_v43  ;;  %v981_v43 = vld [vmem:[#allocation11 + $0x28] sm:$0xff]  ;;  %1690 = vmatprep.subr.mxu1 %v982_v42 }
 0x30f   :  { %1613 = vmatprep.mubr.f32.mxu1 %v2028_v44  ;;  %1691 = vmatpush3.msra.mxu1 %v982_v42  ;;  %v980_v44 = vld [vmem:[#allocation11 + $0x20] sm:$0xff] }
 0x310   :  { %1692 = vmatprep.subr.mxu1 %v981_v43 }
 0x311   :  { %1693 = vmatpush3.msra.mxu1 %v981_v43 }
 0x312   :  { %1614 = vmatmul.mubr.f32.gmra.mxu1 %v2032_v45  ;;  %v979_v45 = vld [vmem:[#allocation11 + $0x18] sm:$0xff]  ;;  %1694 = vmatprep.subr.mxu1 %v980_v44 }
 0x313   :  { %1695 = vmatpush3.msra.mxu1 %v980_v44 }
 0x314   :  { %1696 = vmatprep.subr.mxu1 %v979_v45 }
 0x315   :  { %1697 = vmatpush3.msra.mxu1 %v979_v45 }
 0x316   :  { %1698 = vmatprep.subr.mxu1 %v978_v61 }
 0x317   :  { %1699 = vmatpush3.msra.mxu1 %v978_v61 }
 0x318   :  { %1700 = vmatprep.subr.mxu1 %v977_v62 }
 0x319   :  { %1701 = vmatpush3.msra.mxu1 %v977_v62 }
 0x31a   :  { %1702 = vmatprep.subr.mxu1 %v976_v63 }
 0x31b   :  { %1703 = vmatpush3.msra.mxu1 %v976_v63 }
 0x3b6   :  { %v1594_v16 = vpop.f32.mrf.mxu1 }
 0x3b8   :  { %v729_v29 = vpop.f32.mrf.mxu1 }
 0x3b9   :  { %1648 = vmatprep.mubr.f32.mxu0 %v729_v29 }
 0x3ba   :  { %v1597_v47 = vpop.f32.mrf.mxu1  ;;  %1649 = vmatmul.mubr.f32.vlgmr.msra.gmra.mxu0 %v1594_v16 }
 0x3bc   :  { %v739_v48 = vpop.f32.mrf.mxu1 }
 0x3bd   :  { %1651 = vmatprep.mubr.f32.mxu0 %v739_v48 }
 0x3be   :  { %v1600_v49 = vpop.f32.mrf.mxu1  ;;  %1652 = vmatmul.mubr.f32.gmra.mxu0 %v1597_v47 }
 0x3c0   :  { %v749_v50 = vpop.f32.mrf.mxu1 }
 0x3c1   :  { %1654 = vmatprep.mubr.f32.mxu0 %v749_v50 }
 0x3c2   :  { %v1603_v51 = vpop.f32.mrf.mxu1  ;;  %1655 = vmatmul.mubr.f32.gmra.mxu0 %v1600_v49 }
 0x3c4   :  { %v759_v52 = vpop.f32.mrf.mxu1 }
 0x3c5   :  { %1657 = vmatprep.mubr.f32.mxu0 %v759_v52 }
 0x3c6   :  { %v1606_v53 = vpop.f32.mrf.mxu1  ;;  %1658 = vmatmul.mubr.f32.gmra.mxu0 %v1603_v51 }
 0x3c8   :  { %v769_v54 = vpop.f32.mrf.mxu1 }
 0x3c9   :  { %1660 = vmatprep.mubr.f32.mxu0 %v769_v54 }
 0x3ca   :  { %v1609_v55 = vpop.f32.mrf.mxu1  ;;  %1661 = vmatmul.mubr.f32.gmra.mxu0 %v1606_v53 }
 0x3cc   :  { %v779_v56 = vpop.f32.mrf.mxu1 }
 0x3cd   :  { %1663 = vmatprep.mubr.f32.mxu0 %v779_v56 }
 0x3ce   :  { %v1612_v57 = vpop.f32.mrf.mxu1  ;;  %1664 = vmatmul.mubr.f32.gmra.mxu0 %v1609_v55 }
 0x3d0   :  { %v789_v58 = vpop.f32.mrf.mxu1 }
 0x3d1   :  { %1666 = vmatprep.mubr.f32.mxu0 %v789_v58 }
 0x3d2   :  { %v1615_v59 = vpop.f32.mrf.mxu1  ;;  %1667 = vmatmul.mubr.f32.gmra.mxu0 %v1612_v57 }
 0x3d4   :  { %v799_v60 = vpop.f32.mrf.mxu1 }
 0x3d5   :  { %1669 = vmatprep.mubr.f32.mxu0 %v799_v60 }
 0x3d6   :  { %1670 = vmatmul.mubr.f32.gmra.mxu0 %v1615_v59 }
 0x47a   :  { %v1650_v0 = vpop.f32.mrf.mxu0 }
 0x47b   :  { %v903_v5 = vadd.f32 %v1650_v0, %v1198_v1 }
 0x47c   :  { %v897_v2 = vpop.f32.mrf.mxu0 }
 0x47d   :  { %v898_v3 = vadd.f32 %v1198_v1, %v897_v2 }
 0x47e   :  { %v1653_v6 = vpop.f32.mrf.mxu0 }
 0x47f   :  { %1704 = vmatprep.mubr.f32.mxu1 %v898_v3  ;;  %v913_v9 = vadd.f32 %v1653_v6, %v1198_v1 }
 0x480   :  { %v907_v7 = vpop.f32.mrf.mxu0  ;;  %1705 = vmatmul.mubr.f32.vlgmr.msra.gmra.mxu1 %v903_v5 }
 0x481   :  { %v908_v8 = vadd.f32 %v1198_v1, %v907_v7 }
 0x482   :  { %v1656_v10 = vpop.f32.mrf.mxu0 }
 0x483   :  { %1707 = vmatprep.mubr.f32.mxu1 %v908_v8  ;;  %v923_v13 = vadd.f32 %v1656_v10, %v1198_v1 }
 0x484   :  { %v917_v11 = vpop.f32.mrf.mxu0  ;;  %1708 = vmatmul.mubr.f32.gmra.mxu1 %v913_v9 }
 0x485   :  { %v918_v12 = vadd.f32 %v1198_v1, %v917_v11 }
 0x486   :  { %v1659_v14 = vpop.f32.mrf.mxu0 }
 0x487   :  { %1710 = vmatprep.mubr.f32.mxu1 %v918_v12  ;;  %v933_v4 = vadd.f32 %v1659_v14, %v1198_v1 }
 0x488   :  { %v927_v21 = vpop.f32.mrf.mxu0  ;;  %1711 = vmatmul.mubr.f32.gmra.mxu1 %v923_v13 }
 0x489   :  { %v928_v22 = vadd.f32 %v1198_v1, %v927_v21 }
 0x48a   :  { %v1662_v23 = vpop.f32.mrf.mxu0 }
 0x48b   :  { %1713 = vmatprep.mubr.f32.mxu1 %v928_v22  ;;  %v943_v25 = vadd.f32 %v1662_v23, %v1198_v1 }
 0x48c   :  { %v937_v19 = vpop.f32.mrf.mxu0  ;;  %1714 = vmatmul.mubr.f32.gmra.mxu1 %v933_v4 }
 0x48d   :  { %v938_v24 = vadd.f32 %v1198_v1, %v937_v19 }
 0x48e   :  { %v1665_v20 = vpop.f32.mrf.mxu0 }
 0x48f   :  { %1716 = vmatprep.mubr.f32.mxu1 %v938_v24  ;;  %v953_v27 = vadd.f32 %v1665_v20, %v1198_v1 }
 0x490   :  { %v947_v26 = vpop.f32.mrf.mxu0  ;;  %1717 = vmatmul.mubr.f32.gmra.mxu1 %v943_v25 }
 0x491   :  { %v948_v17 = vadd.f32 %v1198_v1, %v947_v26 }
 0x492   :  { %v1668_v31 = vpop.f32.mrf.mxu0 }
 0x493   :  { %1719 = vmatprep.mubr.f32.mxu1 %v948_v17  ;;  %v963_v46 = vadd.f32 %v1668_v31, %v1198_v1 }
 0x494   :  { %v957_v18 = vpop.f32.mrf.mxu0  ;;  %1720 = vmatmul.mubr.f32.gmra.mxu1 %v953_v27 }
 0x495   :  { %v958_v33 = vadd.f32 %v1198_v1, %v957_v18 }
 0x496   :  { %v1671_v15 = vpop.f32.mrf.mxu0 }
 0x497   :  { %1722 = vmatprep.mubr.f32.mxu1 %v958_v33  ;;  %v973_v32 = vadd.f32 %v1671_v15, %v1198_v1 }
 0x498   :  { %v967_v28 = vpop.f32.mrf.mxu0  ;;  %1723 = vmatmul.mubr.f32.gmra.mxu1 %v963_v46 }
 0x499   :  { %v968_v30 = vadd.f32 %v1198_v1, %v967_v28 }
 0x49b   :  { %1725 = vmatprep.mubr.f32.mxu1 %v968_v30 }
 0x49c   :  { %1726 = vmatmul.mubr.f32.gmra.mxu1 %v973_v32 }
 0x540   :  { %v1706_v35 = vpop.f32.mrf.mxu1 }
 0x541   :  { %v1071_v36 = vadd.f32 %v1706_v35, %v2072_v34 }
 0x542   :  { %v1065_v37 = vpop.f32.mrf.mxu1 }
 0x543   :  { %v1145_v38 = vmax.f32 %v1071_v36, 0.0  ;;  %v1066_v39 = vadd.f32 %v2072_v34, %v1065_v37 }
 0x544   :  { %v1709_v40 = vpop.f32.mrf.mxu1 }
 0x545   :  { %1161 = vst [vmem:[#allocation13 + $0x8] sm:$0xff] %v1145_v38  ;;  %v1144_v41 = vmax.f32 %v1066_v39, 0.0  ;;  %v1081_v42 = vadd.f32 %v1709_v40, %v2072_v34 }
 0x546   :  { %v1075_v43 = vpop.f32.mrf.mxu1 }
 0x547   :  { %1160 = vst [vmem:[#allocation13] sm:$0xff] %v1144_v41  ;;  %v1147_v44 = vmax.f32 %v1081_v42, 0.0  ;;  %v1076_v45 = vadd.f32 %v2072_v34, %v1075_v43 }
 0x548   :  { %v1712_v16 = vpop.f32.mrf.mxu1 }
 0x549   :  { %1163 = vst [vmem:[#allocation13 + $0x18] sm:$0xff] %v1147_v44  ;;  %v1146_v29 = vmax.f32 %v1076_v45, 0.0  ;;  %v1091_v47 = vadd.f32 %v1712_v16, %v2072_v34 }
 0x54a   :  { %v1085_v48 = vpop.f32.mrf.mxu1 }
 0x54b   :  { %1162 = vst [vmem:[#allocation13 + $0x10] sm:$0xff] %v1146_v29  ;;  %v1149_v49 = vmax.f32 %v1091_v47, 0.0  ;;  %v1086_v50 = vadd.f32 %v2072_v34, %v1085_v48 }
 0x54c   :  { %v1715_v51 = vpop.f32.mrf.mxu1 }
 0x54d   :  { %1165 = vst [vmem:[#allocation13 + $0x28] sm:$0xff] %v1149_v49  ;;  %v1148_v52 = vmax.f32 %v1086_v50, 0.0  ;;  %v1101_v53 = vadd.f32 %v1715_v51, %v2072_v34 }
 0x54e   :  { %v1095_v54 = vpop.f32.mrf.mxu1 }
 0x54f   :  { %1164 = vst [vmem:[#allocation13 + $0x20] sm:$0xff] %v1148_v52  ;;  %v1151_v55 = vmax.f32 %v1101_v53, 0.0  ;;  %v1096_v56 = vadd.f32 %v2072_v34, %v1095_v54 }
 0x550   :  { %v1718_v57 = vpop.f32.mrf.mxu1 }
 0x551   :  { %1167 = vst [vmem:[#allocation13 + $0x38] sm:$0xff] %v1151_v55  ;;  %v1150_v58 = vmax.f32 %v1096_v56, 0.0  ;;  %v1111_v59 = vadd.f32 %v1718_v57, %v2072_v34 }
 0x552   :  { %v1105_v60 = vpop.f32.mrf.mxu1 }
 0x553   :  { %1166 = vst [vmem:[#allocation13 + $0x30] sm:$0xff] %v1150_v58  ;;  %v1153_v61 = vmax.f32 %v1111_v59, 0.0  ;;  %v1106_v62 = vadd.f32 %v2072_v34, %v1105_v60 }
 0x554   :  { %v1721_v63 = vpop.f32.mrf.mxu1 }
 0x555   :  { %1169 = vst [vmem:[#allocation13 + $0x48] sm:$0xff] %v1153_v61  ;;  %v1152_v0 = vmax.f32 %v1106_v62, 0.0  ;;  %v1121_v1 = vadd.f32 %v1721_v63, %v2072_v34 }
 0x556   :  { %v1115_v2 = vpop.f32.mrf.mxu1 }
 0x557   :  { %1168 = vst [vmem:[#allocation13 + $0x40] sm:$0xff] %v1152_v0  ;;  %v1155_v3 = vmax.f32 %v1121_v1, 0.0  ;;  %v1116_v5 = vadd.f32 %v2072_v34, %v1115_v2 }
 0x558   :  { %v1724_v6 = vpop.f32.mrf.mxu1 }
 0x559   :  { %1171 = vst [vmem:[#allocation13 + $0x58] sm:$0xff] %v1155_v3  ;;  %v1154_v7 = vmax.f32 %v1116_v5, 0.0  ;;  %v1131_v8 = vadd.f32 %v1724_v6, %v2072_v34 }
 0x55a   :  { %v1125_v9 = vpop.f32.mrf.mxu1 }
 0x55b   :  { %1170 = vst [vmem:[#allocation13 + $0x50] sm:$0xff] %v1154_v7  ;;  %v1157_v10 = vmax.f32 %v1131_v8, 0.0  ;;  %v1126_v11 = vadd.f32 %v2072_v34, %v1125_v9 }
 0x55c   :  { %v1727_v12 = vpop.f32.mrf.mxu1 }
 0x55d   :  { %1173 = vst [vmem:[#allocation13 + $0x68] sm:$0xff] %v1157_v10  ;;  %v1156_v13 = vmax.f32 %v1126_v11, 0.0  ;;  %v1141_v14 = vadd.f32 %v1727_v12, %v2072_v34 }
 0x55e   :  { %v1135_v21 = vpop.f32.mrf.mxu1 }
 0x55f   :  { %1172 = vst [vmem:[#allocation13 + $0x60] sm:$0xff] %v1156_v13  ;;  %v1159_v22 = vmax.f32 %v1141_v14, 0.0  ;;  %v1136_v4 = vadd.f32 %v2072_v34, %v1135_v21 }
 0x561   :  { %1175 = vst [vmem:[#allocation13 + $0x78] sm:$0xff] %v1159_v22  ;;  %v1158_v23 = vmax.f32 %v1136_v4, 0.0 }
 0x563   :  { %1174 = vst [vmem:[#allocation13 + $0x70] sm:$0xff] %v1158_v23 }
 0x564   :  { %1868 = shalt.err (!%p1865_p6)
}
 0x565   :  { %1187 = dma.vmem_to_hbm [thread:$0]  %s1182_s26, 2048, %s2106_s10, [#allocation4], %s1889_s18, %s1889_s18, %s1890_s19  }
 0x566   :  { %1885 = dma.done.wait [#allocation4], 2048  }
 0x567   :  { %1886 = vsyncadd [#allocation4], 4294965248 }
 0x568   :  { %1191 = vsyncpa [#allocation3], 1 }
 0x569   :  { %1192 = vsyncpa [#allocation6], 1 }
 0x56a   :  { %1193 = vsyncpa [#allocation9], 1 }
 0x56b   :  { %1194 = vsyncpa [#allocation12], 1 }
 0x56c   :  { %1195 = vsyncpa [#allocation4], 1 }

</bundles_post_ra>
